<compile_context>
chip_gen: v7x
topology: tpu7x:2x2x1
jax: 0.10.0
libtpu: 0.0.40
codegen_flags: <defaults>
</compile_context>

<pallas_src>
import functools
import math

import jax
import jax.numpy as jnp
from jax import lax
from jax.experimental import pallas as pl
from jax.experimental.pallas import tpu as pltpu


_LANE = 128                       # vreg lane width
_SUBLANE = 8                      # f32 sublanes per vreg
_DEFAULT_TOKENS_PER_TILE = 512    # tokens handled per grid step (shrunk to fit)
_GATHER_DEPTH = 16                # in-flight row DMAs in the HBM-gather path
_ONEHOT_VOCAB_MAX = 2048          # one-hot/MXU path cap (lower on v5e, higher
                                  # on v6e/v7x if the table fits; tuning knob)


def _round_up(x, m):
    return (x + m - 1) // m * m


def _vmem_limits():
    """(planning budget, scoped-VMEM limit) derived from the actual chip."""
    cap = 64 * 2**20                      # conservative fallback (v7x-sized)
    try:
        info = pltpu.get_tpu_info()
        cap = int(getattr(info, "vmem_capacity_bytes", cap)) or cap
    except Exception:
        pass
    budget = int(cap * 0.70)              # what tiles/tables are planned against
    limit = int(cap * 0.85)               # handed to Mosaic as vmem_limit_bytes
    return budget, limit


# ----------------------------------------------------------------------------
# Path A: VMEM-resident table, gather as a (scaled) one-hot matmul on the MXU.
# ----------------------------------------------------------------------------
def _onehot_embed_kernel(ids_ref, table_ref, out_ref, *, scale):
    # ids_ref:   (T, 1)  int32 token ids for this tile (VMEM)
    # table_ref: (V, Dp) embedding table, VMEM-resident (single buffer)
    # out_ref:   (T, Dp) scaled embeddings (lane/sublane dense)
    t_tile = out_ref.shape[0]
    vocab = table_ref.shape[0]
    eq = ids_ref[...] == lax.broadcasted_iota(jnp.int32, (t_tile, vocab), 1)
    # Fold sqrt(d_model) into the "one-hot" -> no post-matmul (T, Dp) multiply.
    sel = jnp.where(eq, jnp.float32(scale), jnp.float32(0.0)).astype(table_ref.dtype)
    out_ref[...] = jnp.dot(
        sel, table_ref[...],
        precision=lax.Precision.HIGHEST,          # parity with a true gather
        preferred_element_type=jnp.float32,
    ).astype(out_ref.dtype)


def _embed_tiles_onehot(flat_ids, table, t_tile, scale, vmem_limit):
    n = flat_ids.shape[0]
    vocab, d_pad = table.shape
    n_pad = _round_up(n, t_tile)
    ids_col = jnp.pad(flat_ids, (0, n_pad - n)).reshape(n_pad, 1)
    n_blocks = n_pad // t_tile

    def _call(single_buffer_table):
        table_kwargs = {}
        if single_buffer_table:
            # Constant index_map -> never re-DMA'd; one buffer is enough and
            # halves the resident table's VMEM footprint.
            table_kwargs["pipeline_mode"] = pl.Buffered(1)
        return pl.pallas_call(
            functools.partial(_onehot_embed_kernel, scale=scale),
            out_shape=jax.ShapeDtypeStruct((n_pad, d_pad), table.dtype),
            grid=(n_blocks,),
            in_specs=[
                pl.BlockSpec((t_tile, 1), lambda i: (i, 0)),           # id tile
                pl.BlockSpec((vocab, d_pad), lambda i: (0, 0),         # table
                             **table_kwargs),
            ],
            out_specs=pl.BlockSpec((t_tile, d_pad), lambda i: (i, 0)),
            compiler_params=pltpu.CompilerParams(
                dimension_semantics=("parallel",),
                vmem_limit_bytes=vmem_limit,
            ),
        )(ids_col, table)

    try:
        return _call(True)
    except Exception:
        # Safety net: fall back to the default double-buffered table spec.
        return _call(False)


# ----------------------------------------------------------------------------
# Path B: table stays in HBM; per-row DMA gather straight into the output
# block with a deep semaphore ring (start(t+DEPTH) issued before wait(t)).
# ----------------------------------------------------------------------------
def _dma_gather_embed_kernel(ids_ref, table_hbm, out_ref, sems, *, scale, depth):
    # ids_ref:   (1, T)  int32 token ids for this tile (SMEM)
    # table_hbm: (V, Dp) embedding table left in HBM (memory_space=pl.ANY)
    # out_ref:   (T, Dp) output block (VMEM) -- also the DMA gather target
    # sems:      (2*depth,) DMA semaphores (2x depth so start precedes wait)
    t_tile = out_ref.shape[0]
    n_slots = 2 * depth                       # power of two

    def _start(t):
        slot = t & (n_slots - 1)
        pltpu.make_async_copy(
            table_hbm.at[pl.ds(ids_ref[0, t], 1), :],
            out_ref.at[pl.ds(t, 1), :],
            sems.at[slot],
        ).start()

    def _wait(t):
        slot = t & (n_slots - 1)
        # Same dst shape / semaphore -> same byte count; src row is irrelevant
        # for the wait, so use a fixed one (avoids an extra SMEM read).
        pltpu.make_async_copy(
            table_hbm.at[pl.ds(0, 1), :],
            out_ref.at[pl.ds(t, 1), :],
            sems.at[slot],
        ).wait()

    prime = min(depth, t_tile)
    for t in range(prime):                    # static: keep `depth` in flight
        _start(t)

    steady = t_tile - prime
    if steady > 0:
        def _ring(t, carry):
            _start(t + prime)                 # issue next row before waiting
            _wait(t)
            return carry
        lax.fori_loop(0, steady, _ring, 0, unroll=8)

    for t in range(steady, t_tile):           # static drain (<= depth waits)
        _wait(t)

    # One dense, vectorized scale over the whole gathered tile (in place).
    out_ref[...] = (out_ref[...].astype(jnp.float32) * scale).astype(out_ref.dtype)


def _embed_tiles_gather(flat_ids, table, t_tile, scale, vmem_limit):
    n = flat_ids.shape[0]
    _, d_pad = table.shape
    n_pad = _round_up(n, t_tile)
    n_blocks = n_pad // t_tile
    ids2d = jnp.pad(flat_ids, (0, n_pad - n)).reshape(n_blocks, t_tile)

    return pl.pallas_call(
        functools.partial(_dma_gather_embed_kernel, scale=scale,
                          depth=_GATHER_DEPTH),
        out_shape=jax.ShapeDtypeStruct((n_pad, d_pad), table.dtype),
        grid=(n_blocks,),
        in_specs=[
            # Per-tile ids land in SMEM (data-dependent DMA source indices).
            pl.BlockSpec((1, t_tile), lambda i: (i, 0),
                         memory_space=pltpu.MemorySpace.SMEM),
            pl.BlockSpec(memory_space=pl.ANY),        # table stays in HBM
        ],
        out_specs=pl.BlockSpec((t_tile, d_pad), lambda i: (i, 0)),
        scratch_shapes=[pltpu.SemaphoreType.DMA((2 * _GATHER_DEPTH,))],
        compiler_params=pltpu.CompilerParams(
            dimension_semantics=("parallel",),
            vmem_limit_bytes=vmem_limit,
        ),
    )(ids2d, table)


# ----------------------------------------------------------------------------
# Wrapper: layout decisions + path selection.
# ----------------------------------------------------------------------------
def token_embeddings(token_ids, embedding_table, *, tokens_per_tile=None,
                     force_hbm_gather=False):
    """token_ids: (B, S) int; embedding_table: (V, D) -> (B, S, D).

    Equivalent to nn.Embedding(V, D)(x) * sqrt(D).
    """
    B, S = token_ids.shape
    V, D = embedding_table.shape
    dtype = embedding_table.dtype
    itemsize = jnp.dtype(dtype).itemsize
    scale = math.sqrt(D)
    n_tok = B * S

    budget, vmem_limit = _vmem_limits()

    # Lane-dense embedding width (real d_model sizes are already x128; the tiny
    # test case pads 32 -> 128 and the padding is sliced off afterwards).
    d_pad = _round_up(D, _LANE)
    table = embedding_table
    if d_pad != D:
        table = jnp.pad(embedding_table, ((0, 0), (0, d_pad - D)))

    # Clamp ids so a bad token id can never become an out-of-bounds DMA/gather.
    # (PyTorch would raise on an invalid index; we clamp instead.)
    flat_ids = jnp.clip(token_ids.reshape(-1).astype(jnp.int32), 0, V - 1)

    # Token tile: multiple of 8 sublanes, sized against the chip's real VMEM
    # (double-buffered output + one-hot operand / DMA-ring output headroom).
    t_tile = (_DEFAULT_TOKENS_PER_TILE if tokens_per_tile is None
              else int(tokens_per_tile))
    t_tile = min(t_tile, _round_up(n_tok, _SUBLANE))
    t_tile = max(_SUBLANE, _round_up(t_tile, _SUBLANE))
    per_token_bytes = 3 * d_pad * itemsize + max(V, _LANE) * 4
    while t_tile > _SUBLANE and t_tile * per_token_bytes > budget // 2:
        t_tile = max(_SUBLANE, _round_up(t_tile // 2, _SUBLANE))

    # Path choice: single-buffered resident table + one-hot tile + out buffers.
    table_bytes = V * d_pad * itemsize
    onehot_bytes = t_tile * V * 4
    tile_out_bytes = t_tile * d_pad * itemsize
    table_fits_vmem = (table_bytes + onehot_bytes + 3 * tile_out_bytes <= budget)
    use_onehot = ((not force_hbm_gather) and table_fits_vmem
                  and V <= _ONEHOT_VOCAB_MAX)

    if use_onehot:
        out_flat = _embed_tiles_onehot(flat_ids, table, t_tile, scale, vmem_limit)
    else:
        out_flat = _embed_tiles_gather(flat_ids, table, t_tile, scale, vmem_limit)

    return out_flat[:n_tok, :D].reshape(B, S, D)


if __name__ == "__main__":
    # Small shapes consistent with the module's forward:
    #   x: (num_batch=2, sequence_length=8) int token ids
    #   embedding table: (dictionary_size=16, d_model=32), N(0,1) init like
    #   nn.Embedding's default.
    B, S = 2, 8
    dictionary_size, d_model = 16, 32

    key = jax.random.PRNGKey(0)
    k_ids, k_emb = jax.random.split(key)

    token_ids = jax.random.randint(
        k_ids, (B, S), minval=0, maxval=dictionary_size, dtype=jnp.int32)
    embedding_table = jax.random.normal(
        k_emb, (dictionary_size, d_model), dtype=jnp.float32)

    # Pure-JAX reference: embedding lookup * sqrt(d_model).
    ref = jnp.take(embedding_table, token_ids, axis=0) * math.sqrt(d_model)

    # Fast path: VMEM-resident table + one-hot MXU gather (precision=HIGHEST).
    out = jax.block_until_ready(token_embeddings(token_ids, embedding_table))
    assert out.shape == (B, S, d_model), out.shape
    assert jnp.allclose(out, ref, atol=1e-4, rtol=1e-4), "onehot path mismatch"

    # General path (exercised explicitly): table in HBM, deep DMA row gather
    # straight into the output block (exact copy + scale).
    out2 = jax.block_until_ready(
        token_embeddings(token_ids, embedding_table, force_hbm_gather=True))
    assert out2.shape == (B, S, d_model), out2.shape
    assert jnp.allclose(out2, ref, atol=1e-5, rtol=1e-5), "gather path mismatch"

    print("KERNEL_OK")
</pallas_src>

<mosaic_0001>
module attributes {stable_mosaic.version = 11 : i64} {
  func.func @_onehot_embed_kernel(%arg0: i32, %arg1: memref<16x1xi32, #tpu.memory_space<vmem>>, %arg2: memref<16x128xf32, #tpu.memory_space<vmem>>, %arg3: memref<16x128xf32, #tpu.memory_space<vmem>>) attributes {dimension_semantics = [#tpu.dimension_semantics<parallel>], iteration_bounds = array<i64: 1>, scalar_prefetch = 0 : i64, scratch_operands = 0 : i64, tpu.core_type = #tpu.core_type<tc>, window_params = [{transform_indices = @transform_0, window_bounds = array<i64: 16, 1>}, {pipeline_mode = #tpu.pipeline_mode<synchronous>, transform_indices = @transform_1, window_bounds = array<i64: 16, 128>}, {transform_indices = @transform_2, window_bounds = array<i64: 16, 128>}]} {
    %c0 = arith.constant 0 : index
    %c0_0 = arith.constant 0 : index
    %0 = vector.load %arg1[%c0, %c0_0] : memref<16x1xi32, #tpu.memory_space<vmem>>, vector<16x1xi32>
    %1 = tpu.iota {dimensions = array<i32: 1>} : vector<16x16xi32>
    %2 = vector.broadcast %0 : vector<16x1xi32> to vector<16x16xi32>
    %3 = arith.cmpi eq, %2, %1 : vector<16x16xi32>
    %cst = arith.constant 5.65685415 : f32
    %cst_1 = arith.constant 0.000000e+00 : f32
    %4 = vector.broadcast %cst : f32 to vector<16x16xf32>
    %5 = vector.broadcast %cst_1 : f32 to vector<16x16xf32>
    %6 = arith.select %3, %4, %5 : vector<16x16xi1>, vector<16x16xf32>
    %c0_2 = arith.constant 0 : index
    %c0_3 = arith.constant 0 : index
    %7 = vector.load %arg2[%c0_2, %c0_3] : memref<16x128xf32, #tpu.memory_space<vmem>>, vector<16x128xf32>
    %cst_4 = arith.constant dense<0.000000e+00> : vector<16x128xf32>
    %8 = tpu.matmul %6, %7, %cst_4 {dimension_numbers = #tpu.dot_dimension_numbers<[1], [0], [0], [1], [0, 0, 1, 1], [], []>, precision = #tpu.contract_precision<fp32>} : vector<16x16xf32>, vector<16x128xf32>, vector<16x128xf32> -> vector<16x128xf32>
    %c0_5 = arith.constant 0 : index
    %c0_6 = arith.constant 0 : index
    %9 = vector.load %arg3[%c0_5, %c0_6] : memref<16x128xf32, #tpu.memory_space<vmem>>, vector<16x128xf32>
    tpu.vector_store %arg3[%c0_5, %c0_6], %8 {strides = array<i32>} : memref<16x128xf32, #tpu.memory_space<vmem>>, vector<16x128xf32>,
    return
  }
  func.func @transform_0(%arg0: i32) -> (i32, i32) {
    %c0_i32 = arith.constant 0 : i32
    %c0_i32_0 = arith.constant 0 : i32
    return %arg0, %c0_i32 : i32, i32
  }
  func.func @transform_1(%arg0: i32) -> (i32, i32) {
    %c0_i32 = arith.constant 0 : i32
    %c0_i32_0 = arith.constant 0 : i32
    %c0_i32_1 = arith.constant 0 : i32
    return %c0_i32, %c0_i32_0 : i32, i32
  }
  func.func @transform_2(%arg0: i32) -> (i32, i32) {
    %c0_i32 = arith.constant 0 : i32
    %c0_i32_0 = arith.constant 0 : i32
    return %arg0, %c0_i32 : i32, i32
  }
}

module attributes {stable_mosaic.version = 11 : i64} {
  func.func @_onehot_embed_kernel(%arg0: i32, %arg1: memref<16x1xi32, #tpu.memory_space<vmem>>, %arg2: memref<16x128xf32, #tpu.memory_space<vmem>>, %arg3: memref<16x128xf32, #tpu.memory_space<vmem>>) attributes {dimension_semantics = [#tpu.dimension_semantics<parallel>], iteration_bounds = array<i64: 1>, scalar_prefetch = 0 : i64, scratch_operands = 0 : i64, tpu.core_type = #tpu.core_type<tc>, window_params = [{transform_indices = @transform_0, window_bounds = array<i64: 16, 1>}, {pipeline_mode = #tpu.pipeline_mode<synchronous>, transform_indices = @transform_1, window_bounds = array<i64: 16, 128>}, {transform_indices = @transform_2, window_bounds = array<i64: 16, 128>}]} {
    %c0 = arith.constant 0 : index
    %c0_0 = arith.constant 0 : index
    %0 = vector.load %arg1[%c0, %c0_0] : memref<16x1xi32, #tpu.memory_space<vmem>>, vector<16x1xi32>
    %1 = tpu.iota {dimensions = array<i32: 1>} : vector<16x16xi32>
    %2 = vector.broadcast %0 : vector<16x1xi32> to vector<16x16xi32>
    %3 = arith.cmpi eq, %2, %1 : vector<16x16xi32>
    %cst = arith.constant 5.65685415 : f32
    %cst_1 = arith.constant 0.000000e+00 : f32
    %4 = vector.broadcast %cst : f32 to vector<16x16xf32>
    %5 = vector.broadcast %cst_1 : f32 to vector<16x16xf32>
    %6 = arith.select %3, %4, %5 : vector<16x16xi1>, vector<16x16xf32>
    %c0_2 = arith.constant 0 : index
    %c0_3 = arith.constant 0 : index
    %7 = vector.load %arg2[%c0_2, %c0_3] : memref<16x128xf32, #tpu.memory_space<vmem>>, vector<16x128xf32>
    %cst_4 = arith.constant dense<0.000000e+00> : vector<16x128xf32>
    %8 = tpu.matmul %6, %7, %cst_4 {dimension_numbers = #tpu.dot_dimension_numbers<[1], [0], [0], [1], [0, 0, 1, 1], [], []>, precision = #tpu.contract_precision<fp32>} : vector<16x16xf32>, vector<16x128xf32>, vector<16x128xf32> -> vector<16x128xf32>
    %c0_5 = arith.constant 0 : index
    %c0_6 = arith.constant 0 : index
    %9 = vector.load %arg3[%c0_5, %c0_6] : memref<16x128xf32, #tpu.memory_space<vmem>>, vector<16x128xf32>
    tpu.vector_store %arg3[%c0_5, %c0_6], %8 {strides = array<i32>} : memref<16x128xf32, #tpu.memory_space<vmem>>, vector<16x128xf32>,
    return
  }
  func.func @transform_0(%arg0: i32) -> (i32, i32) {
    %c0_i32 = arith.constant 0 : i32
    %c0_i32_0 = arith.constant 0 : i32
    return %arg0, %c0_i32 : i32, i32
  }
  func.func @transform_1(%arg0: i32) -> (i32, i32) {
    %c0_i32 = arith.constant 0 : i32
    %c0_i32_0 = arith.constant 0 : i32
    %c0_i32_1 = arith.constant 0 : i32
    return %c0_i32, %c0_i32_0 : i32, i32
  }
  func.func @transform_2(%arg0: i32) -> (i32, i32) {
    %c0_i32 = arith.constant 0 : i32
    %c0_i32_0 = arith.constant 0 : i32
    return %arg0, %c0_i32 : i32, i32
  }
}

</mosaic_0001>

<bundles_post_ra>
// kernel: tpu_custom_call.1
= control target key start
LH: loop header
LB: loop body
LE: loop exit
PB: predicated region body
PF: predicated region fallthrough
CT: control target
= control target key end

     0   :  { %v685_v1 = vmov 0   ;;  %s729_s0 = inlined_call_operand.vmem [shape: s32[16,1], index: 0, kind: input, shape index: {}]   ;;  %s730_s1 = inlined_call_operand.vmem [shape: f32[16,128], index: 1, kind: input, shape index: {}]   ;;  %s731_s2 = inlined_call_operand.hbm [shape: f32[16,128], index: 2, kind: output, shape index: {}]  }
   0x1   :  { %v12_v0 = vld [vmem:[%s729_s0] sm:$0xff]  ;;  %660 = vset.pattern.permute.xlu0 %v685_v1 }
   0x2   :  { %7 = vsyncpa [#allocation3], 0  ;;  %17 = vperm.xlu0 %660, %v12_v0   ;;  %v13_v2 = vld [vmem:[%s729_s0 + $0x8] sm:$0xff]  ;;  %v26_v3 = vld [vmem:[%s730_s1] sm:$0xff]  ;;  %v14_v19 = vlaneseq  ;;  %vm28_vm0 = vcmask 130048   ;;  %v686_v22 = vmov 0.0  }
   0x3   :  { %v27_v4 = vld [vmem:[%s730_s1 + $0x8] sm:$0xff]  ;;  %v36_v5 = vand.u32 4294901760, %v26_v3  ;;  %s687_s0 = smov [#allocation2]  }
   0x4   :  { %v39_v6 = vand.u32 4294901760, %v27_v4  ;;  %v15_v20 = vand.u32 127, %v14_v19  ;;  %s544_s1 = sshll.u32 %s687_s0, 4  ;;  %s545_s1 = int_to_ptr.vmem [resolvable:$true] %s544_s1 }
   0x5   :  { %v124_v8 = vsub.f32 %v26_v3, %v36_v5  ;;  %s661_s17 = scalar_lea.vmem %s545_s1, 256  ;;  %p666_p1 = scmp.lt.s32.totalorder %s545_s1, %s545_s1 }
   0x6   :  { %20 = vperm.xlu0 %660, %v13_v2   ;;  %v621_v7 = vpack.c.bf16 %v39_v6, %v36_v5  ;;  %v131_v9 = vsub.f32 %v27_v4, %v39_v6  ;;  %p662_p0 = scmp.ne.s32.totalorder %s545_s1, %s661_s17  ;;  %p667_p2 = scmp.lt.s32.totalorder %s661_s17, %s661_s17 }
   0x7   :  { %v125_v10 = vand.u32 4294901760, %v124_v8 }
   0x8   :  { %634 = vmatprep.subr.bf16.mxu0 %v621_v7  ;;  %622 = vmatprep.subr.bf16.mxu1 %v621_v7  ;;  %v132_v11 = vand.u32 4294901760, %v131_v9  ;;  %v629_v18 = vpack.c.bf16 %v131_v9, %v124_v8  ;;  %p668_p3 = por %p667_p2, %p666_p1 }
   0x9   :  { %636 = vmatpush3.bf16.msra.mxu0 %v621_v7  ;;  %624 = vmatpush3.bf16.msra.mxu1 %v621_v7  ;;  %v126_v12 = vsub.f32 %v124_v8, %v125_v10 }
   0xa   :  { %v133_v13 = vsub.f32 %v131_v9, %v132_v11  ;;  %v637_v14 = vpack.c.bf16 %v132_v11, %v125_v10  ;;  %p669_p4 = pnand %p668_p3, %p662_p0 }
   0xb   :  { %v127_v15 = vand.u32 4294901760, %v126_v12 }
   0xc   :  { %v134_v16 = vand.u32 4294901760, %v133_v13  ;;  %638 = vmatprep.subr.bf16.mxu0 %v637_v14 }
   0xe   :  { %v625_v17 = vpack.c.bf16 %v134_v16, %v127_v15 }
  0x10   :  { %626 = vmatprep.subr.bf16.mxu1 %v625_v17 }
  0x81   :  { %v18_v21 = vpop.permute.xlu0 %17 }
  0x82   :  { %vm22_vm1 = vcmp.eq.s32.totalorder %v18_v21, %v15_v20 }
  0x83   :  { %v24_v23 = vsel %vm22_vm1, 5.656854, %v686_v22 }
  0x84   :  { %v30_v24 = vsel %vm28_vm0, %v24_v23, 0 }
  0x85   :  { %v102_v25 = vand.u32 4294901760, %v30_v24  ;;  %v21_v26 = vpop.permute.xlu0 %20 }
  0x86   :  { %vm23_vm2 = vcmp.eq.s32.totalorder %v21_v26, %v15_v20 }
  0x87   :  { %v103_v27 = vsub.f32 %v30_v24, %v102_v25  ;;  %v25_v28 = vsel %vm23_vm2, 5.656854, %v686_v22 }
  0x88   :  { %v33_v29 = vsel %vm28_vm0, %v25_v28, 0 }
  0x89   :  { %v112_v30 = vand.u32 4294901760, %v33_v29  ;;  %v104_v31 = vand.u32 4294901760, %v103_v27 }
  0x8b   :  { %v113_v32 = vsub.f32 %v33_v29, %v112_v30  ;;  %604 = vmatprep.mubr.f32.mxu0 %v104_v31  ;;  %v105_v33 = vsub.f32 %v103_v27, %v104_v31 }
  0x8d   :  { %v106_v34 = vand.u32 4294901760, %v105_v33  ;;  %v114_v35 = vand.u32 4294901760, %v113_v32 }
  0x8f   :  { %583 = vmatprep.mubr.f32.mxu1 %v106_v34  ;;  %605 = vmatmul.mubr.f32.vlgmr.msra.gmra.mrb[0].mxu0 %v114_v35  ;;  %v115_v36 = vsub.f32 %v113_v32, %v114_v35 }
  0x90   :  { %611 = vmatprep.mubr.f32.mxu0 %v102_v25  ;;  %640 = vmatpush3.bf16.msra.mxu0 %v637_v14 }
  0x91   :  { %v116_v37 = vand.u32 4294901760, %v115_v36  ;;  %642 = vmatprep.subr.bf16.mxu0 %v621_v7 }
  0x93   :  { %584 = vmatmul.mubr.f32.vlgmr.msra.gmra.mrb[0].mxu1 %v116_v37 }
  0x94   :  { %628 = vmatpush3.bf16.msra.mxu1 %v625_v17  ;;  %590 = vmatprep.mubr.f32.mxu1 %v102_v25 }
  0x95   :  { %630 = vmatprep.subr.bf16.mxu1 %v629_v18 }
  0x97   :  { %612 = vmatmul.mubr.f32.vlgmr.msra.gmra.mrb[0].mxu0 %v112_v30 }
  0x98   :  { %618 = vmatprep.mubr.f32.mxu0 %v102_v25  ;;  %644 = vmatpush3.bf16.msra.mxu0 %v621_v7 }
  0x9b   :  { %591 = vmatmul.mubr.f32.vlgmr.msra.gmra.mrb[0].mxu1 %v112_v30 }
  0x9c   :  { %632 = vmatpush3.bf16.msra.mxu1 %v629_v18  ;;  %597 = vmatprep.mubr.f32.mxu1 %v103_v27 }
  0x9f   :  { %619 = vmatmul.mubr.f32.vlgmr.msra.gmra.mrb[0].mxu0 %v112_v30 }
  0xa3   :  { %598 = vmatmul.mubr.f32.vlgmr.msra.gmra.mrb[0].mxu1 %v113_v32 }
 0x172   :  { %v620_v38 = vpop.f32.mrb[0].mxu0 }
 0x173   :  { %v527_v39 = vpop.f32.mrb[1].mxu0 }
 0x176   :  { %v599_v40 = vpop.f32.mrb[0].mxu1 }
 0x177   :  { %v645_v41 = vadd.f32 %v620_v38, %v599_v40  ;;  %v281_v42 = vpop.f32.mrb[1].mxu1 }
 0x178   :  { %v646_v43 = vadd.f32 %v527_v39, %v281_v42 }
 0x179   :  { %538 = vst [vmem:[#allocation2 + $0x8] sm:$0xff] %v645_v41 }
 0x17a   :  { %537 = vst [vmem:[#allocation2] sm:$0xff] %v646_v43 }
 0x17b   :  { %672 = shalt.err (!%p669_p4)
}
 0x17c   :  { %s673_s20 = scalar_lea.hbm %s731_s2, 256 }
 0x17d   :  { %p674_p5 = scmp.ne.s32.totalorder %s731_s2, %s673_s20  ;;  %p677_p6 = scmp.lt.u32.totalorder %s673_s20, %s731_s2 }
 0x17f   :  { %p679_p7 = pnand %p677_p6, %p674_p5 }
 0x181   :  { %682 = shalt.err (!%p679_p7)
}
 0x182   :  { %s688_s25 = smov 128   ;;  %s689_s26 = smov 8  }
 0x183   :  { %550 = dma.vmem_to_hbm [thread:$0]  %s545_s1, 256, %s731_s2, [#allocation3], %s688_s25, %s688_s25, %s689_s26  }
 0x184   :  { %683 = dma.done.wait [#allocation3], 256  }
 0x185   :  { %684 = vsyncadd [#allocation3], 4294967040 }
 0x186   :  { %554 = vsyncpa [#allocation3], 1 }

// kernel: tpu_custom_call.1
= control target key start
LH: loop header
LB: loop body
LE: loop exit
PB: predicated region body
PF: predicated region fallthrough
CT: control target
= control target key end

     0   :  { %v685_v1 = vmov 0   ;;  %s729_s0 = inlined_call_operand.vmem [shape: s32[16,1], index: 0, kind: input, shape index: {}]   ;;  %s730_s1 = inlined_call_operand.vmem [shape: f32[16,128], index: 1, kind: input, shape index: {}]   ;;  %s731_s2 = inlined_call_operand.hbm [shape: f32[16,128], index: 2, kind: output, shape index: {}]  }
   0x1   :  { %v12_v0 = vld [vmem:[%s729_s0] sm:$0xff]  ;;  %660 = vset.pattern.permute.xlu0 %v685_v1 }
   0x2   :  { %7 = vsyncpa [#allocation3], 0  ;;  %17 = vperm.xlu0 %660, %v12_v0   ;;  %v13_v2 = vld [vmem:[%s729_s0 + $0x8] sm:$0xff]  ;;  %v26_v3 = vld [vmem:[%s730_s1] sm:$0xff]  ;;  %v14_v19 = vlaneseq  ;;  %vm28_vm0 = vcmask 130048   ;;  %v686_v22 = vmov 0.0  }
   0x3   :  { %v27_v4 = vld [vmem:[%s730_s1 + $0x8] sm:$0xff]  ;;  %v36_v5 = vand.u32 4294901760, %v26_v3  ;;  %s687_s0 = smov [#allocation2]  }
   0x4   :  { %v39_v6 = vand.u32 4294901760, %v27_v4  ;;  %v15_v20 = vand.u32 127, %v14_v19  ;;  %s544_s1 = sshll.u32 %s687_s0, 4  ;;  %s545_s1 = int_to_ptr.vmem [resolvable:$true] %s544_s1 }
   0x5   :  { %v124_v8 = vsub.f32 %v26_v3, %v36_v5  ;;  %s661_s17 = scalar_lea.vmem %s545_s1, 256  ;;  %p666_p1 = scmp.lt.s32.totalorder %s545_s1, %s545_s1 }
   0x6   :  { %20 = vperm.xlu0 %660, %v13_v2   ;;  %v621_v7 = vpack.c.bf16 %v39_v6, %v36_v5  ;;  %v131_v9 = vsub.f32 %v27_v4, %v39_v6  ;;  %p662_p0 = scmp.ne.s32.totalorder %s545_s1, %s661_s17  ;;  %p667_p2 = scmp.lt.s32.totalorder %s661_s17, %s661_s17 }
   0x7   :  { %v125_v10 = vand.u32 4294901760, %v124_v8 }
   0x8   :  { %634 = vmatprep.subr.bf16.mxu0 %v621_v7  ;;  %622 = vmatprep.subr.bf16.mxu1 %v621_v7  ;;  %v132_v11 = vand.u32 4294901760, %v131_v9  ;;  %v629_v18 = vpack.c.bf16 %v131_v9, %v124_v8  ;;  %p668_p3 = por %p667_p2, %p666_p1 }
   0x9   :  { %636 = vmatpush3.bf16.msra.mxu0 %v621_v7  ;;  %624 = vmatpush3.bf16.msra.mxu1 %v621_v7  ;;  %v126_v12 = vsub.f32 %v124_v8, %v125_v10 }
   0xa   :  { %v133_v13 = vsub.f32 %v131_v9, %v132_v11  ;;  %v637_v14 = vpack.c.bf16 %v132_v11, %v125_v10  ;;  %p669_p4 = pnand %p668_p3, %p662_p0 }
   0xb   :  { %v127_v15 = vand.u32 4294901760, %v126_v12 }
   0xc   :  { %v134_v16 = vand.u32 4294901760, %v133_v13  ;;  %638 = vmatprep.subr.bf16.mxu0 %v637_v14 }
   0xe   :  { %v625_v17 = vpack.c.bf16 %v134_v16, %v127_v15 }
  0x10   :  { %626 = vmatprep.subr.bf16.mxu1 %v625_v17 }
  0x81   :  { %v18_v21 = vpop.permute.xlu0 %17 }
  0x82   :  { %vm22_vm1 = vcmp.eq.s32.totalorder %v18_v21, %v15_v20 }
  0x83   :  { %v24_v23 = vsel %vm22_vm1, 5.656854, %v686_v22 }
  0x84   :  { %v30_v24 = vsel %vm28_vm0, %v24_v23, 0 }
  0x85   :  { %v102_v25 = vand.u32 4294901760, %v30_v24  ;;  %v21_v26 = vpop.permute.xlu0 %20 }
  0x86   :  { %vm23_vm2 = vcmp.eq.s32.totalorder %v21_v26, %v15_v20 }
  0x87   :  { %v103_v27 = vsub.f32 %v30_v24, %v102_v25  ;;  %v25_v28 = vsel %vm23_vm2, 5.656854, %v686_v22 }
  0x88   :  { %v33_v29 = vsel %vm28_vm0, %v25_v28, 0 }
  0x89   :  { %v112_v30 = vand.u32 4294901760, %v33_v29  ;;  %v104_v31 = vand.u32 4294901760, %v103_v27 }
  0x8b   :  { %v113_v32 = vsub.f32 %v33_v29, %v112_v30  ;;  %604 = vmatprep.mubr.f32.mxu0 %v104_v31  ;;  %v105_v33 = vsub.f32 %v103_v27, %v104_v31 }
  0x8d   :  { %v106_v34 = vand.u32 4294901760, %v105_v33  ;;  %v114_v35 = vand.u32 4294901760, %v113_v32 }
  0x8f   :  { %583 = vmatprep.mubr.f32.mxu1 %v106_v34  ;;  %605 = vmatmul.mubr.f32.vlgmr.msra.gmra.mrb[0].mxu0 %v114_v35  ;;  %v115_v36 = vsub.f32 %v113_v32, %v114_v35 }
  0x90   :  { %611 = vmatprep.mubr.f32.mxu0 %v102_v25  ;;  %640 = vmatpush3.bf16.msra.mxu0 %v637_v14 }
  0x91   :  { %v116_v37 = vand.u32 4294901760, %v115_v36  ;;  %642 = vmatprep.subr.bf16.mxu0 %v621_v7 }
  0x93   :  { %584 = vmatmul.mubr.f32.vlgmr.msra.gmra.mrb[0].mxu1 %v116_v37 }
  0x94   :  { %628 = vmatpush3.bf16.msra.mxu1 %v625_v17  ;;  %590 = vmatprep.mubr.f32.mxu1 %v102_v25 }
  0x95   :  { %630 = vmatprep.subr.bf16.mxu1 %v629_v18 }
  0x97   :  { %612 = vmatmul.mubr.f32.vlgmr.msra.gmra.mrb[0].mxu0 %v112_v30 }
  0x98   :  { %618 = vmatprep.mubr.f32.mxu0 %v102_v25  ;;  %644 = vmatpush3.bf16.msra.mxu0 %v621_v7 }
  0x9b   :  { %591 = vmatmul.mubr.f32.vlgmr.msra.gmra.mrb[0].mxu1 %v112_v30 }
  0x9c   :  { %632 = vmatpush3.bf16.msra.mxu1 %v629_v18  ;;  %597 = vmatprep.mubr.f32.mxu1 %v103_v27 }
  0x9f   :  { %619 = vmatmul.mubr.f32.vlgmr.msra.gmra.mrb[0].mxu0 %v112_v30 }
  0xa3   :  { %598 = vmatmul.mubr.f32.vlgmr.msra.gmra.mrb[0].mxu1 %v113_v32 }
 0x172   :  { %v620_v38 = vpop.f32.mrb[0].mxu0 }
 0x173   :  { %v527_v39 = vpop.f32.mrb[1].mxu0 }
 0x176   :  { %v599_v40 = vpop.f32.mrb[0].mxu1 }
 0x177   :  { %v645_v41 = vadd.f32 %v620_v38, %v599_v40  ;;  %v281_v42 = vpop.f32.mrb[1].mxu1 }
 0x178   :  { %v646_v43 = vadd.f32 %v527_v39, %v281_v42 }
 0x179   :  { %538 = vst [vmem:[#allocation2 + $0x8] sm:$0xff] %v645_v41 }
 0x17a   :  { %537 = vst [vmem:[#allocation2] sm:$0xff] %v646_v43 }
 0x17b   :  { %672 = shalt.err (!%p669_p4)
}
 0x17c   :  { %s673_s20 = scalar_lea.hbm %s731_s2, 256 }
 0x17d   :  { %p674_p5 = scmp.ne.s32.totalorder %s731_s2, %s673_s20  ;;  %p677_p6 = scmp.lt.u32.totalorder %s673_s20, %s731_s2 }
 0x17f   :  { %p679_p7 = pnand %p677_p6, %p674_p5 }
 0x181   :  { %682 = shalt.err (!%p679_p7)
}
 0x182   :  { %s688_s25 = smov 128   ;;  %s689_s26 = smov 8  }
 0x183   :  { %550 = dma.vmem_to_hbm [thread:$0]  %s545_s1, 256, %s731_s2, [#allocation3], %s688_s25, %s688_s25, %s689_s26  }
 0x184   :  { %683 = dma.done.wait [#allocation3], 256  }
 0x185   :  { %684 = vsyncadd [#allocation3], 4294967040 }
 0x186   :  { %554 = vsyncpa [#allocation3], 1 }

</bundles_post_ra>
